<compile_context>
chip_gen: v6e
topology: v6e:2x2x1
jax: 0.10.0
libtpu: 0.0.40
codegen_flags: <defaults>
</compile_context>

<pallas_src>
import jax
import jax.numpy as jnp
from jax.experimental import pallas as pl
from jax.experimental.pallas import tpu as pltpu

EPS = 1e-5


# ----------------------------------------------------------------------------
# VMEM-aware sizing helpers
# ----------------------------------------------------------------------------
def _physical_vmem_bytes() -> int:
    """Per-TensorCore VMEM capacity; conservative fallback = v7x (64 MiB)."""
    try:
        info = pltpu.get_tpu_info()
        v = getattr(info, "vmem_capacity_bytes", None)
        if v:
            return int(v)
    except Exception:
        pass
    return 64 << 20


def _round_down_mult(x: int, m: int) -> int:
    return (x // m) * m


def _choose_feature_tile(B: int, F: int, itemsize: int, block_budget: int):
    """Largest feature slab (multiple of 128) whose double-buffered in+out
    blocks with the full batch fit the budget.  None -> use batched path."""
    per_lane = 2 * 2 * B * itemsize          # 2 buffers x (in + out) per lane
    tf = _round_down_mult(block_budget // max(per_lane, 1), 128)
    if tf < 128:
        return None                          # full batch does not fit a block
    if tf >= F:
        total = B * F * itemsize
        if total >= (4 << 20) and F % 256 == 0:
            return F // 2                    # keep >=2 grid steps (v7x 2 TCs)
        return F                             # small problem: collapse the grid
    return tf


# ----------------------------------------------------------------------------
# Path 1: full batch resident per feature slab (exact two-pass statistics)
# ----------------------------------------------------------------------------
def _bn1d_full_batch_kernel(x_ref, gamma_ref, beta_ref, o_ref):
    # x_ref: (B, tf)   gamma/beta: (1, tf)   o_ref: (B, tf)
    x = x_ref[...].astype(jnp.float32)
    mean = jnp.mean(x, axis=0, keepdims=True)                    # (1, tf)
    centered = x - mean
    var = jnp.mean(centered * centered, axis=0, keepdims=True)   # biased var
    inv_std = jax.lax.rsqrt(var + EPS)
    y = centered * inv_std * gamma_ref[...] + beta_ref[...]
    o_ref[...] = y.astype(o_ref.dtype)


def _bn_full_batch(x, gamma2, beta2, tf, vmem_limit):
    B, F = x.shape
    nf = pl.cdiv(F, tf)
    return pl.pallas_call(
        _bn1d_full_batch_kernel,
        out_shape=jax.ShapeDtypeStruct((B, F), x.dtype),
        grid_spec=pltpu.PrefetchScalarGridSpec(
            num_scalar_prefetch=0,
            grid=(nf,),
            in_specs=[
                pl.BlockSpec((B, tf), lambda j: (0, j)),   # full batch, feature slab
                pl.BlockSpec((1, tf), lambda j: (0, j)),   # gamma
                pl.BlockSpec((1, tf), lambda j: (0, j)),   # beta
            ],
            out_specs=pl.BlockSpec((B, tf), lambda j: (0, j)),
        ),
        compiler_params=pltpu.CompilerParams(
            dimension_semantics=("parallel",),
            vmem_limit_bytes=int(vmem_limit),
        ),
    )(x, gamma2, beta2)


# ----------------------------------------------------------------------------
# Path 2: large batch -> accumulate stats over batch tiles, then normalize
# ----------------------------------------------------------------------------
def _make_stats_kernel(B_total: int, tb: int):
    def kernel(x_ref, mean_ref, rstd_ref, sum_sc, sq_sc):
        bi = pl.program_id(1)

        @pl.when(bi == 0)
        def _init():
            sum_sc[...] = jnp.zeros_like(sum_sc)
            sq_sc[...] = jnp.zeros_like(sq_sc)

        x = x_ref[...].astype(jnp.float32)                        # (tb, tf)
        row = bi * tb + jax.lax.broadcasted_iota(jnp.int32, x.shape, 0)
        x = jnp.where(row < B_total, x, 0.0)                      # mask padded rows
        sum_sc[...] += jnp.sum(x, axis=0, keepdims=True)
        sq_sc[...] += jnp.sum(x * x, axis=0, keepdims=True)

        @pl.when(bi == pl.num_programs(1) - 1)
        def _finalize():
            inv_n = 1.0 / B_total
            mean = sum_sc[...] * inv_n
            # TODO(synk): E[x^2]-mean^2 can cancel if |mean| >> std; kept
            # single-pass for bandwidth (one read of x for statistics).
            var = jnp.maximum(sq_sc[...] * inv_n - mean * mean, 0.0)
            mean_ref[...] = mean
            rstd_ref[...] = jax.lax.rsqrt(var + EPS)

    return kernel


def _bn1d_apply_kernel(x_ref, mean_ref, rstd_ref, gamma_ref, beta_ref, o_ref):
    x = x_ref[...].astype(jnp.float32)
    y = (x - mean_ref[...]) * rstd_ref[...] * gamma_ref[...] + beta_ref[...]
    o_ref[...] = y.astype(o_ref.dtype)


def _bn_batched(x, gamma2, beta2, tb, tf, vmem_limit):
    B, F = x.shape
    nf = pl.cdiv(F, tf)
    nb = pl.cdiv(B, tb)

    mean, rstd = pl.pallas_call(
        _make_stats_kernel(B, tb),
        out_shape=(jax.ShapeDtypeStruct((1, F), jnp.float32),
                   jax.ShapeDtypeStruct((1, F), jnp.float32)),
        grid_spec=pltpu.PrefetchScalarGridSpec(
            num_scalar_prefetch=0,
            grid=(nf, nb),                        # batch (reduction) axis innermost
            in_specs=[pl.BlockSpec((tb, tf), lambda j, b: (b, j))],
            out_specs=(pl.BlockSpec((1, tf), lambda j, b: (0, j)),
                       pl.BlockSpec((1, tf), lambda j, b: (0, j))),
            scratch_shapes=[pltpu.VMEM((1, tf), jnp.float32),
                            pltpu.VMEM((1, tf), jnp.float32)],
        ),
        compiler_params=pltpu.CompilerParams(
            dimension_semantics=("parallel", "arbitrary"),
            vmem_limit_bytes=int(vmem_limit),
        ),
    )(x)

    return pl.pallas_call(
        _bn1d_apply_kernel,
        out_shape=jax.ShapeDtypeStruct((B, F), x.dtype),
        grid_spec=pltpu.PrefetchScalarGridSpec(
            num_scalar_prefetch=0,
            grid=(nf, nb),
            in_specs=[
                pl.BlockSpec((tb, tf), lambda j, b: (b, j)),
                pl.BlockSpec((1, tf), lambda j, b: (0, j)),
                pl.BlockSpec((1, tf), lambda j, b: (0, j)),
                pl.BlockSpec((1, tf), lambda j, b: (0, j)),
                pl.BlockSpec((1, tf), lambda j, b: (0, j)),
            ],
            out_specs=pl.BlockSpec((tb, tf), lambda j, b: (b, j)),
        ),
        compiler_params=pltpu.CompilerParams(
            dimension_semantics=("parallel", "parallel"),
            vmem_limit_bytes=int(vmem_limit),
        ),
    )(x, mean, rstd, gamma2, beta2)


# ----------------------------------------------------------------------------
# Public wrapper (ContEmbedder.forward equivalent)
# ----------------------------------------------------------------------------
def cont_embedder_forward(inp, gamma, beta, *, input_bn=True,
                          force_batched=False, batched_tb=512):
    """JAX/Pallas equivalent of ContEmbedder.forward.

    inp: dict with key 'cont' -> (B, F) float array.
    gamma, beta: (F,) BatchNorm affine parameters.
    """
    x = inp["cont"]
    if not input_bn:
        return x

    B, F = x.shape
    itemsize = jnp.dtype(x.dtype).itemsize

    phys = _physical_vmem_bytes()
    block_budget = min(max(phys // 4, 8 << 20), 32 << 20)   # bytes for pipelined blocks
    vmem_limit = min(phys // 2, 64 << 20)                   # explicit scoped VMEM limit

    gamma2 = gamma.reshape(1, F).astype(jnp.float32)
    beta2 = beta.reshape(1, F).astype(jnp.float32)

    tf = None if force_batched else _choose_feature_tile(B, F, itemsize, block_budget)
    if tf is not None:
        return _bn_full_batch(x, gamma2, beta2, tf, vmem_limit)

    # Large-batch (or forced) path: roofline-sized (tb, tf) tiles, accumulate
    # statistics across batch tiles, then normalize in a second sweep.
    tb = min(int(batched_tb), B)
    if tb != B:
        tb = max(8, _round_down_mult(tb, 8))
    tf_b = 512 if F > 512 else F
    return _bn_batched(x, gamma2, beta2, tb, tf_b, vmem_limit)


# ----------------------------------------------------------------------------
# Reference + demo
# ----------------------------------------------------------------------------
def _reference_bn(x, gamma, beta):
    x32 = x.astype(jnp.float32)
    mean = jnp.mean(x32, axis=0, keepdims=True)
    var = jnp.mean((x32 - mean) ** 2, axis=0, keepdims=True)  # biased (BN training)
    y = (x32 - mean) / jnp.sqrt(var + EPS) * gamma.reshape(1, -1) + beta.reshape(1, -1)
    return y.astype(x.dtype)


if __name__ == "__main__":
    k1, k2 = jax.random.split(jax.random.PRNGKey(0))

    # Small shapes consistent with the module: batch=8, num_dims=256.
    B, F = 8, 256
    x = jax.random.normal(k1, (B, F), dtype=jnp.float32) * 3.0 + 1.5
    gamma = jnp.ones((F,), dtype=jnp.float32)   # nn.BatchNorm1d default weight
    beta = jnp.zeros((F,), dtype=jnp.float32)   # nn.BatchNorm1d default bias

    out = cont_embedder_forward({"cont": x}, gamma, beta, input_bn=True)
    out = jax.block_until_ready(out)
    ref = _reference_bn(x, gamma, beta)
    assert out.shape == (B, F)
    assert jnp.allclose(out, ref, atol=1e-5, rtol=1e-5), "full-batch path mismatch"

    # Exercise the large-batch accumulator path (incl. batch-tile masking) on a
    # small shape: B=60 is not a multiple of the batch tile (16).
    B2, F2 = 60, 256
    x2 = jax.random.normal(k2, (B2, F2), dtype=jnp.float32) * 2.0 - 0.5
    g2 = jnp.ones((F2,), dtype=jnp.float32)
    b2 = jnp.zeros((F2,), dtype=jnp.float32)
    out2 = cont_embedder_forward({"cont": x2}, g2, b2,
                                 force_batched=True, batched_tb=16)
    out2 = jax.block_until_ready(out2)
    ref2 = _reference_bn(x2, g2, b2)
    assert jnp.allclose(out2, ref2, atol=1e-4, rtol=1e-4), "batched path mismatch"

    # TODO(synk): running_mean/running_var buffer updates of nn.BatchNorm1d are
    # module state, not part of the forward output, and are not reproduced.
    print("KERNEL_OK")
</pallas_src>

<mosaic_0001>
module attributes {stable_mosaic.version = 11 : i64} {
  func.func @_bn1d_full_batch_kernel(%arg0: i32, %arg1: memref<8x256xf32, #tpu.memory_space<vmem>>, %arg2: memref<1x256xf32, #tpu.memory_space<vmem>>, %arg3: memref<1x256xf32, #tpu.memory_space<vmem>>, %arg4: memref<8x256xf32, #tpu.memory_space<vmem>>) attributes {dimension_semantics = [#tpu.dimension_semantics<parallel>], iteration_bounds = array<i64: 1>, scalar_prefetch = 0 : i64, scratch_operands = 0 : i64, tpu.core_type = #tpu.core_type<tc>, window_params = [{transform_indices = @transform_0, window_bounds = array<i64: 8, 256>}, {transform_indices = @transform_1, window_bounds = array<i64: 1, 256>}, {transform_indices = @transform_2, window_bounds = array<i64: 1, 256>}, {transform_indices = @transform_3, window_bounds = array<i64: 8, 256>}]} {
    %c0 = arith.constant 0 : index
    %c0_0 = arith.constant 0 : index
    %0 = vector.load %arg1[%c0, %c0_0] : memref<8x256xf32, #tpu.memory_space<vmem>>, vector<8x256xf32>
    %cst = arith.constant dense<0.000000e+00> : vector<256xf32>
    %1 = vector.multi_reduction <add>, %0, %cst [0] : vector<8x256xf32> to vector<256xf32>
    %2 = vector.shape_cast %1 : vector<256xf32> to vector<1x256xf32>
    %cst_1 = arith.constant 8.000000e+00 : f32
    %3 = vector.broadcast %cst_1 : f32 to vector<1x256xf32>
    %4 = arith.divf %2, %3 : vector<1x256xf32>
    %5 = vector.broadcast %4 : vector<1x256xf32> to vector<8x256xf32>
    %6 = arith.subf %0, %5 : vector<8x256xf32>
    %7 = arith.mulf %6, %6 : vector<8x256xf32>
    %cst_2 = arith.constant dense<0.000000e+00> : vector<256xf32>
    %8 = vector.multi_reduction <add>, %7, %cst_2 [0] : vector<8x256xf32> to vector<256xf32>
    %9 = vector.shape_cast %8 : vector<256xf32> to vector<1x256xf32>
    %cst_3 = arith.constant 8.000000e+00 : f32
    %10 = vector.broadcast %cst_3 : f32 to vector<1x256xf32>
    %11 = arith.divf %9, %10 : vector<1x256xf32>
    %cst_4 = arith.constant 9.99999974E-6 : f32
    %12 = vector.broadcast %cst_4 : f32 to vector<1x256xf32>
    %13 = arith.addf %11, %12 : vector<1x256xf32>
    %14 = math.rsqrt %13 : vector<1x256xf32>
    %15 = vector.broadcast %14 : vector<1x256xf32> to vector<8x256xf32>
    %16 = arith.mulf %6, %15 : vector<8x256xf32>
    %c0_5 = arith.constant 0 : index
    %c0_6 = arith.constant 0 : index
    %17 = vector.load %arg2[%c0_5, %c0_6] : memref<1x256xf32, #tpu.memory_space<vmem>>, vector<1x256xf32>
    %18 = vector.broadcast %17 : vector<1x256xf32> to vector<8x256xf32>
    %19 = arith.mulf %16, %18 : vector<8x256xf32>
    %c0_7 = arith.constant 0 : index
    %c0_8 = arith.constant 0 : index
    %20 = vector.load %arg3[%c0_7, %c0_8] : memref<1x256xf32, #tpu.memory_space<vmem>>, vector<1x256xf32>
    %21 = vector.broadcast %20 : vector<1x256xf32> to vector<8x256xf32>
    %22 = arith.addf %19, %21 : vector<8x256xf32>
    %c0_9 = arith.constant 0 : index
    %c0_10 = arith.constant 0 : index
    %23 = vector.load %arg4[%c0_9, %c0_10] : memref<8x256xf32, #tpu.memory_space<vmem>>, vector<8x256xf32>
    tpu.vector_store %arg4[%c0_9, %c0_10], %22 {strides = array<i32>} : memref<8x256xf32, #tpu.memory_space<vmem>>, vector<8x256xf32>,
    return
  }
  func.func @transform_0(%arg0: i32) -> (i32, i32) {
    %c0_i32 = arith.constant 0 : i32
    %c0_i32_0 = arith.constant 0 : i32
    return %c0_i32, %arg0 : i32, i32
  }
  func.func @transform_1(%arg0: i32) -> (i32, i32) {
    %c0_i32 = arith.constant 0 : i32
    %c0_i32_0 = arith.constant 0 : i32
    return %c0_i32, %arg0 : i32, i32
  }
  func.func @transform_2(%arg0: i32) -> (i32, i32) {
    %c0_i32 = arith.constant 0 : i32
    %c0_i32_0 = arith.constant 0 : i32
    return %c0_i32, %arg0 : i32, i32
  }
  func.func @transform_3(%arg0: i32) -> (i32, i32) {
    %c0_i32 = arith.constant 0 : i32
    %c0_i32_0 = arith.constant 0 : i32
    return %c0_i32, %arg0 : i32, i32
  }
}

</mosaic_0001>

<bundles_post_ra>
// kernel: tpu_custom_call.1
= control target key start
LH: loop header
LB: loop body
LE: loop exit
PB: predicated region body
PF: predicated region fallthrough
CT: control target
= control target key end

     0   :  { %8 = vsyncpa [#allocation3], 0  ;;  %s234_s0 = inlined_call_operand.hbm [shape: f32[8,256], index: 0, kind: input, shape index: {}]   ;;  %s235_s1 = inlined_call_operand.hbm [shape: f32[1,256], index: 1, kind: input, shape index: {}]   ;;  %s236_s2 = inlined_call_operand.vmem [shape: f32[1,256], index: 2, kind: input, shape index: {}]   ;;  %s237_s3 = inlined_call_operand.hbm [shape: f32[8,256], index: 3, kind: output, shape index: {}]  }
   0x1   :  { %9 = vsyncpa [#allocation6], 0 }
   0x2   :  { %10 = vsyncpa [#allocation4], 0  ;;  %s199_s12 = smov [#allocation2]   ;;  %s200_s14 = smov [#allocation5]  }
   0x3   :  { %s17_s13 = sshll.u32 %s199_s12, 4  ;;  %s27_s15 = sshll.u32 %s200_s14, 4  ;;  %s18_s13 = int_to_ptr.vmem [resolvable:$true] %s17_s13  ;;  %s28_s15 = int_to_ptr.vmem [resolvable:$true] %s27_s15 }
   0x4   :  { %s141_s16 = scalar_lea.vmem %s18_s13, 256  ;;  %p146_p1 = scmp.lt.s32.totalorder %s18_s13, %s18_s13 }
   0x5   :  { %p142_p0 = scmp.ne.s32.totalorder %s18_s13, %s141_s16  ;;  %p147_p2 = scmp.lt.s32.totalorder %s141_s16, %s141_s16 }
   0x7   :  { %p148_p3 = por %p147_p2, %p146_p1 }
   0x9   :  { %p149_p4 = pnand %p148_p3, %p142_p0 }
   0xb   :  { %152 = shalt.err (!%p149_p4)
}
   0xc   :  { %20 = dma.hbm_to_vmem [thread:$0]  %s234_s0, 256, %s18_s13, [#allocation3]  }
   0xd   :  { %s161_s19 = scalar_lea.vmem %s28_s15, 32  ;;  %p166_p6 = scmp.lt.s32.totalorder %s28_s15, %s28_s15 }
   0xe   :  { %p162_p5 = scmp.ne.s32.totalorder %s28_s15, %s161_s19  ;;  %p167_p7 = scmp.lt.s32.totalorder %s161_s19, %s161_s19 }
  0x10   :  { %p168_p8 = por %p167_p7, %p166_p6 }
  0x12   :  { %p169_p9 = pnand %p168_p8, %p162_p5 }
  0x14   :  { %172 = shalt.err (!%p169_p9)
}
  0x15   :  { %30 = dma.hbm_to_vmem [thread:$0]  %s235_s1, 32, %s28_s15, [#allocation6]  }
  0x16   :  { %193 = dma.done.wait [#allocation3], 256  }
  0x17   :  { %194 = vsyncadd [#allocation3], 4294967040 }
  0x18   :  { %195 = dma.done.wait [#allocation6], 32  }
  0x19   :  { %196 = vsyncadd [#allocation6], 4294967264  ;;  %v39_v0 = vld [vmem:[#allocation2] sm:$0xff]  ;;  %v40_v2 = vld [vmem:[#allocation2 + $0x8] sm:$0xff]  ;;  %v82_v36 = vlaneseq  ;;  %s201_s22 = smov [#allocation7]  }
  0x1a   :  { %v41_v1 = vrot.slane %v39_v0, 4  ;;  %v47_v3 = vrot.slane %v40_v2, 4  ;;  %v80_v39 = vld [vmem:[#allocation5] sm:$0x3]  ;;  %v94_v41 = vld [vmem:[%s236_s2] sm:$0x3] }
  0x1b   :  { %v83_v37 = vshrl.u32 %v82_v36, 7  ;;  %s116_s23 = sshll.u32 %s201_s22, 4  ;;  %s117_s23 = int_to_ptr.vmem [resolvable:$true] %s116_s23 }
  0x1c   :  { %v42_v4 = vadd.f32 %v41_v1, %v39_v0  ;;  %v48_v5 = vadd.f32 %v47_v3, %v40_v2  ;;  %s173_s24 = scalar_lea.vmem %s117_s23, 256  ;;  %p178_p11 = scmp.lt.s32.totalorder %s117_s23, %s117_s23 }
  0x1d   :  { %v84_v38 = vsub.s32 0, %v83_v37  ;;  %v88_v40 = vsub.s32 1, %v83_v37  ;;  %p174_p10 = scmp.ne.s32.totalorder %s117_s23, %s173_s24  ;;  %p179_p12 = scmp.lt.s32.totalorder %s173_s24, %s173_s24 }
  0x1e   :  { %v43_v6 = vrot.slane %v42_v4, 2  ;;  %v49_v7 = vrot.slane %v48_v5, 2 }
  0x1f   :  { %v85_v42 = vrot.slane %v80_v39, %v84_v38  ;;  %v89_v44 = vrot.slane %v80_v39, %v88_v40  ;;  %v99_v47 = vrot.slane %v94_v41, %v84_v38  ;;  %v103_v49 = vrot.slane %v94_v41, %v88_v40  ;;  %p180_p13 = por %p179_p12, %p178_p11 }
  0x20   :  { %v44_v8 = vadd.f32 %v43_v6, %v42_v4  ;;  %v50_v9 = vadd.f32 %v49_v7, %v48_v5 }
  0x21   :  { %p181_p0 = pnand %p180_p13, %p174_p10 }
  0x22   :  { %v45_v10 = vrot.slane %v44_v8, 1  ;;  %v51_v11 = vrot.slane %v50_v9, 1 }
  0x24   :  { %v46_v12 = vadd.f32 %v45_v10, %v44_v8  ;;  %v52_v13 = vadd.f32 %v51_v11, %v50_v9 }
  0x26   :  { %v54_v14 = vmul.f32 0.125, %v46_v12  ;;  %v55_v15 = vmul.f32 0.125, %v52_v13 }
  0x28   :  { %v56_v16 = vsub.f32 %v39_v0, %v54_v14  ;;  %v57_v17 = vsub.f32 %v40_v2, %v55_v15 }
  0x2a   :  { %v58_v18 = vmul.f32 %v56_v16, %v56_v16  ;;  %v59_v19 = vmul.f32 %v57_v17, %v57_v17 }
  0x2c   :  { %v60_v20 = vrot.slane %v58_v18, 4  ;;  %v66_v21 = vrot.slane %v59_v19, 4 }
  0x2e   :  { %v61_v22 = vadd.f32 %v60_v20, %v58_v18  ;;  %v67_v23 = vadd.f32 %v66_v21, %v59_v19 }
  0x30   :  { %v62_v24 = vrot.slane %v61_v22, 2  ;;  %v68_v25 = vrot.slane %v67_v23, 2 }
  0x32   :  { %v63_v26 = vadd.f32 %v62_v24, %v61_v22  ;;  %v69_v27 = vadd.f32 %v68_v25, %v67_v23 }
  0x34   :  { %v64_v28 = vrot.slane %v63_v26, 1  ;;  %v70_v29 = vrot.slane %v69_v27, 1 }
  0x36   :  { %v65_v30 = vadd.f32 %v64_v28, %v63_v26  ;;  %v71_v31 = vadd.f32 %v70_v29, %v69_v27 }
  0x38   :  { %v72_v32 = vmul.f32 0.125, %v65_v30  ;;  %v73_v33 = vmul.f32 0.125, %v71_v31 }
  0x3a   :  { %v74_v34 = vadd.f32 1e-05, %v72_v32  ;;  %v75_v35 = vadd.f32 1e-05, %v73_v33 }
  0x3c   :  { %129 = vrsqrt.f32 %v74_v34 }
  0x3d   :  { %131 = vrsqrt.f32 %v75_v35 }
  0x49   :  { %v130_v43 = vpop.eup %129 }
  0x4a   :  { %v132_v45 = vpop.eup %131  ;;  %v78_v46 = vmul.f32 %v130_v43, %v56_v16 }
  0x4b   :  { %v79_v48 = vmul.f32 %v132_v45, %v57_v17 }
  0x4c   :  { %v92_v50 = vmul.f32 %v85_v42, %v78_v46 }
  0x4d   :  { %v93_v51 = vmul.f32 %v89_v44, %v79_v48 }
  0x4e   :  { %v106_v52 = vadd.f32 %v99_v47, %v92_v50 }
  0x4f   :  { %v107_v53 = vadd.f32 %v103_v49, %v93_v51 }
  0x50   :  { %108 = vst [vmem:[#allocation7] sm:$0xff] %v106_v52 }
  0x51   :  { %109 = vst [vmem:[#allocation7 + $0x8] sm:$0xff] %v107_v53 }
  0x52   :  { %184 = shalt.err (!%p181_p0)
}
  0x53   :  { %119 = dma.vmem_to_hbm [thread:$0]  %s117_s23, 256, %s237_s3, [#allocation4]  }
  0x54   :  { %197 = dma.done.wait [#allocation4], 256  }
  0x55   :  { %198 = vsyncadd [#allocation4], 4294967040 }
  0x56   :  { %123 = vsyncpa [#allocation3], 1 }
  0x57   :  { %124 = vsyncpa [#allocation6], 1 }
  0x58   :  { %125 = vsyncpa [#allocation4], 1 }

</bundles_post_ra>
